<compile_context>
chip_gen: v7x
topology: tpu7x:2x2x1
jax: 0.10.0
libtpu: 0.0.40
codegen_flags: <defaults>
</compile_context>

<pallas_src>
import functools

import jax
import jax.numpy as jnp
from jax.experimental import pallas as pl
from jax.experimental.pallas import tpu as pltpu


def _global_bce_kernel(x_ref, t_ref, out_ref, *,
                       nt_per_core, nt_total, tile_l, lanes_total,
                       acc_w, ragged):
    c = pl.program_id(0)            # core-split axis ("parallel")
    k = pl.program_id(1)            # lane-tile axis ("arbitrary", reduction)
    g = c * nt_per_core + k         # global lane-tile index

    @pl.when(k == 0)
    def _init():
        out_ref[...] = jnp.zeros_like(out_ref)

    def accumulate(mask_tail):
        x = x_ref[...].astype(jnp.float32)
        t = t_ref[...].astype(jnp.float32)
        # BCE-with-logits with one softplus per element: softplus(x) - x*t.
        loss = jnp.maximum(x, 0.0) + jnp.log1p(jnp.exp(-jnp.abs(x))) - x * t
        if mask_tail:
            # Ragged last tile only: lanes past L hold uninitialized VMEM.
            # Mask loss AND t before the loss*t product (garbage may be NaN/inf).
            lane = jax.lax.broadcasted_iota(jnp.int32, x.shape, 1)
            valid = (g * tile_l + lane) < lanes_total
            loss = jnp.where(valid, loss, 0.0)
            t = jnp.where(valid, t, 0.0)
        lt = loss * t

        # Partial lane reduction to acc_w columns: lane-aligned slices of the
        # value just pick vregs, so this is pure VPU adds (same add count as a
        # full-width accumulator) followed by ONE small RMW per plane.
        n_chunks = tile_l // acc_w
        s_loss = loss[:, 0:acc_w]
        s_lt = lt[:, 0:acc_w]
        s_t = t[:, 0:acc_w]
        for j in range(1, n_chunks):
            lo, hi = j * acc_w, (j + 1) * acc_w
            s_loss = s_loss + loss[:, lo:hi]
            s_lt = s_lt + lt[:, lo:hi]
            s_t = s_t + t[:, lo:hi]
        out_ref[0, 0] += s_loss
        out_ref[0, 1] += s_lt
        out_ref[0, 2] += s_t

    if ragged:
        @pl.when(g < nt_total - 1)
        def _steady():
            accumulate(False)

        @pl.when(g == nt_total - 1)
        def _tail():
            accumulate(True)
    else:
        accumulate(False)


def global_bce_loss(inp, tgt, *, block_elems=1 << 20):
    """inp, tgt: (B, 2, T) arrays (PyTorch NCL layout); f32 or bf16.

    Returns (total_loss, beat_loss, no_beat_loss) as f32 scalars.
    """
    assert inp.shape == tgt.shape and inp.ndim == 3 and inp.shape[1] == 2
    B, _, T = inp.shape
    rows = 2 * B

    # Free, contiguous reshapes only (no HBM copies): fold rows toward a
    # sublane-dense (multiple of 8) count whenever T's divisibility allows.
    fold = 1
    for f in (1, 2, 4, 8):
        if T % f == 0 and (rows * f) % 8 == 0:
            fold = f
            break
    else:
        # Best-effort partial fold when T prevents a full multiple-of-8 fold.
        if rows < 8:
            f = 8 // rows
            while f > 1 and T % f != 0:
                f //= 2
            fold = max(f, 1)
    R = rows * fold
    L = T // fold

    x2 = inp.reshape(R, L)
    t2 = tgt.reshape(R, L)

    # Lane tile: multiple of 512, sized so each input block is ~block_elems
    # elements (~4 MiB f32 by default) to amortize the ~0.35us/step overhead.
    tl = max(512, (block_elems // R) // 512 * 512)
    if L <= tl:
        tile_l = L
        nt = 1
    else:
        tile_l = tl
        nt = pl.cdiv(L, tile_l)
        if nt % 2 == 1:
            # Try a slightly smaller tile that yields an even tile count, so
            # the dual-core split below has no phantom steps.
            alt = max(512, ((-(-L // (nt + 1))) + 511) // 512 * 512)
            if alt < tile_l and pl.cdiv(L, alt) % 2 == 0:
                tile_l = alt
                nt = pl.cdiv(L, alt)

    # Dual-TensorCore split (helps v7x; free on single-TC chips since with an
    # even tile count each "core" just gets a contiguous half of the tiles).
    NC = 2 if (nt >= 2 and nt % 2 == 0) else 1
    nt_c = nt // NC

    if tile_l % 512 == 0:
        acc_w = 512
    elif tile_l % 128 == 0:
        acc_w = 128
    else:
        acc_w = tile_l          # tiny single-tile case
    ragged = (L % tile_l) != 0

    kernel = functools.partial(
        _global_bce_kernel,
        nt_per_core=nt_c, nt_total=nt, tile_l=tile_l,
        lanes_total=L, acc_w=acc_w, ragged=ragged)

    in_map = lambda c, k: (0, c * nt_c + k)

    planes = pl.pallas_call(
        kernel,
        out_shape=jax.ShapeDtypeStruct((NC, 3, R, acc_w), jnp.float32),
        grid_spec=pltpu.PrefetchScalarGridSpec(
            num_scalar_prefetch=0,
            grid=(NC, nt_c),
            in_specs=[
                pl.BlockSpec((R, tile_l), in_map),
                pl.BlockSpec((R, tile_l), in_map),
            ],
            out_specs=pl.BlockSpec((1, 3, R, acc_w),
                                   lambda c, k: (c, 0, 0, 0)),
        ),
        compiler_params=pltpu.CompilerParams(
            dimension_semantics=("parallel", "arbitrary"),
            vmem_limit_bytes=48 * 1024 * 1024,
        ),
    )(x2, t2)

    # Tiny wrapper-side finalize (a few KiB): cross-lane reduce, channel split
    # (channel = (row // fold) % 2), and the four class means.
    sum_loss_row = jnp.sum(planes[:, 0], axis=(0, 2))   # (R,)
    sum_lt_row = jnp.sum(planes[:, 1], axis=(0, 2))
    cnt_pos_row = jnp.sum(planes[:, 2], axis=(0, 2))

    is_beat = ((jnp.arange(R) // fold) % 2) == 0

    def split(v):
        b = jnp.sum(jnp.where(is_beat, v, 0.0))
        return b, jnp.sum(v) - b

    sum_loss_b, sum_loss_d = split(sum_loss_row)
    sum_lt_b, sum_lt_d = split(sum_lt_row)
    cnt_pos_b, cnt_pos_d = split(cnt_pos_row)

    n_ch = jnp.float32(B * T)
    beat_loss = sum_lt_b / cnt_pos_b
    no_beat_loss = (sum_loss_b - sum_lt_b) / (n_ch - cnt_pos_b)
    downbeat_loss = sum_lt_d / cnt_pos_d
    no_downbeat_loss = (sum_loss_d - sum_lt_d) / (n_ch - cnt_pos_d)
    total = beat_loss + no_beat_loss + downbeat_loss + no_downbeat_loss
    return total, beat_loss, no_beat_loss


def _reference(inp, tgt):
    """Pure-JAX reference mirroring the PyTorch module."""
    def bce_mean(x, y, mask):
        loss = jnp.maximum(x, 0.0) - x * y + jnp.log1p(jnp.exp(-jnp.abs(x)))
        return jnp.sum(jnp.where(mask, loss, 0.0)) / jnp.sum(mask)

    xb, xd = inp[:, 0, :], inp[:, 1, :]
    tb, td = tgt[:, 0, :], tgt[:, 1, :]
    bl = bce_mean(xb, tb, tb == 1.0)
    nbl = bce_mean(xb, tb, tb == 0.0)
    dl = bce_mean(xd, td, td == 1.0)
    ndl = bce_mean(xd, td, td == 0.0)
    return bl + nbl + dl + ndl, bl, nbl


if __name__ == "__main__":
    key = jax.random.PRNGKey(0)
    k1, k2 = jax.random.split(key)

    def make_case(shape, thresh=0.8):
        inp = jax.random.normal(k1, shape, dtype=jnp.float32)
        tgt = (jax.random.uniform(k2, shape) > thresh).astype(jnp.float32)
        # guarantee both classes present in each channel
        tgt = tgt.at[:, :, 0].set(1.0).at[:, :, 1].set(0.0)
        return inp, tgt

    def check(inp, tgt, **kw):
        total, beat, no_beat = global_bce_loss(inp, tgt, **kw)
        jax.block_until_ready(total)
        r_total, r_beat, r_no_beat = _reference(inp, tgt)
        assert jnp.allclose(total, r_total, atol=1e-5, rtol=1e-5), (total, r_total)
        assert jnp.allclose(beat, r_beat, atol=1e-5, rtol=1e-5), (beat, r_beat)
        assert jnp.allclose(no_beat, r_no_beat, atol=1e-5, rtol=1e-5), (no_beat, r_no_beat)

    # Case 1: dual-core split path (fold=2 -> R=8, L=2000, tile=512 -> nt=4,
    # NC=2, nt_c=2) with a ragged last tile handled off the steady state.
    check(*make_case((2, 2, 4000)), block_elems=4096)

    # Case 2: odd tile count (nt=5) -> single-core multi-tile reduction with a
    # ragged tail and multiple unmasked steady tiles before it.
    check(*make_case((2, 2, 5000)), block_elems=4096)

    # Case 3: generalized row fold for non-multiple-of-8 row counts
    # (B=3 -> rows=6 -> fold=4 -> R=24) and the tiny single-tile path.
    check(*make_case((3, 2, 32), 0.5))

    print("KERNEL_OK")
</pallas_src>

<mosaic_0001>
module attributes {stable_mosaic.version = 11 : i64} {
  func.func @_global_bce_kernel(%arg0: i32, %arg1: i32, %arg2: memref<8x512xf32, #tpu.memory_space<vmem>>, %arg3: memref<8x512xf32, #tpu.memory_space<vmem>>, %arg4: memref<1x3x8x512xf32, #tpu.memory_space<vmem>>) attributes {dimension_semantics = [#tpu.dimension_semantics<parallel>, #tpu.dimension_semantics<arbitrary>], iteration_bounds = array<i64: 2, 2>, scalar_prefetch = 0 : i64, scratch_operands = 0 : i64, tpu.core_type = #tpu.core_type<tc>, window_params = [{transform_indices = @transform_0, window_bounds = array<i64: 8, 512>}, {transform_indices = @transform_1, window_bounds = array<i64: 8, 512>}, {transform_indices = @transform_2, window_bounds = array<i64: 1, 3, 8, 512>}]} {
    %c2_i32 = arith.constant 2 : i32
    %0 = arith.muli %arg0, %c2_i32 : i32
    %1 = arith.addi %0, %arg1 : i32
    %c0_i32 = arith.constant 0 : i32
    %2 = arith.cmpi eq, %arg1, %c0_i32 : i32
    %3 = arith.extui %2 : i1 to i32
    %c0_i32_0 = arith.constant 0 : i32
    %4 = arith.cmpi ne, %3, %c0_i32_0 : i32
    scf.if %4 {
      %cst = arith.constant 0.000000e+00 : f32
      %11 = vector.broadcast %cst : f32 to vector<1x3x8x512xf32>
      %c0 = arith.constant 0 : index
      %c0_4 = arith.constant 0 : index
      %c0_5 = arith.constant 0 : index
      %c0_6 = arith.constant 0 : index
      %12 = vector.load %arg4[%c0, %c0_4, %c0_5, %c0_6] : memref<1x3x8x512xf32, #tpu.memory_space<vmem>>, vector<1x3x8x512xf32>
      tpu.vector_store %arg4[%c0, %c0_4, %c0_5, %c0_6], %11 {strides = array<i32>} : memref<1x3x8x512xf32, #tpu.memory_space<vmem>>, vector<1x3x8x512xf32>,
    } else {
    }
    %c3_i32 = arith.constant 3 : i32
    %5 = arith.cmpi slt, %1, %c3_i32 : i32
    %6 = arith.extui %5 : i1 to i32
    %c0_i32_1 = arith.constant 0 : i32
    %7 = arith.cmpi ne, %6, %c0_i32_1 : i32
    scf.if %7 {
      %c0 = arith.constant 0 : index
      %c0_4 = arith.constant 0 : index
      %11 = vector.load %arg2[%c0, %c0_4] : memref<8x512xf32, #tpu.memory_space<vmem>>, vector<8x512xf32>
      %c0_5 = arith.constant 0 : index
      %c0_6 = arith.constant 0 : index
      %12 = vector.load %arg3[%c0_5, %c0_6] : memref<8x512xf32, #tpu.memory_space<vmem>>, vector<8x512xf32>
      %cst = arith.constant 0.000000e+00 : f32
      %13 = vector.broadcast %cst : f32 to vector<8x512xf32>
      %14 = arith.maximumf %11, %13 : vector<8x512xf32>
      %15 = math.absf %11 : vector<8x512xf32>
      %cst_7 = arith.constant 0.000000e+00 : f32
      %16 = vector.broadcast %cst_7 : f32 to vector<8x512xf32>
      %17 = arith.subf %16, %15 : vector<8x512xf32>
      %18 = math.exp %17 : vector<8x512xf32>
      %19 = math.log1p %18 : vector<8x512xf32>
      %20 = arith.addf %14, %19 : vector<8x512xf32>
      %21 = arith.mulf %11, %12 : vector<8x512xf32>
      %22 = arith.subf %20, %21 : vector<8x512xf32>
      %23 = arith.mulf %22, %12 : vector<8x512xf32>
      %c0_8 = arith.constant 0 : index
      %c0_9 = arith.constant 0 : index
      %c0_10 = arith.constant 0 : index
      %c0_11 = arith.constant 0 : index
      %24 = vector.load %arg4[%c0_8, %c0_9, %c0_10, %c0_11] : memref<1x3x8x512xf32, #tpu.memory_space<vmem>>, vector<1x1x8x512xf32>
      %25 = vector.shape_cast %24 : vector<1x1x8x512xf32> to vector<8x512xf32>
      %26 = arith.addf %25, %22 : vector<8x512xf32>
      %c0_12 = arith.constant 0 : index
      %c0_13 = arith.constant 0 : index
      %c0_14 = arith.constant 0 : index
      %c0_15 = arith.constant 0 : index
      %27 = vector.load %arg4[%c0_12, %c0_13, %c0_14, %c0_15] : memref<1x3x8x512xf32, #tpu.memory_space<vmem>>, vector<1x1x8x512xf32>
      %28 = vector.shape_cast %27 : vector<1x1x8x512xf32> to vector<8x512xf32>
      %29 = vector.shape_cast %26 : vector<8x512xf32> to vector<1x1x8x512xf32>
      tpu.vector_store %arg4[%c0_12, %c0_13, %c0_14, %c0_15], %29 {strides = array<i32>} : memref<1x3x8x512xf32, #tpu.memory_space<vmem>>, vector<1x1x8x512xf32>,
      %c0_16 = arith.constant 0 : index
      %c1 = arith.constant 1 : index
      %c0_17 = arith.constant 0 : index
      %c0_18 = arith.constant 0 : index
      %30 = vector.load %arg4[%c0_16, %c1, %c0_17, %c0_18] : memref<1x3x8x512xf32, #tpu.memory_space<vmem>>, vector<1x1x8x512xf32>
      %31 = vector.shape_cast %30 : vector<1x1x8x512xf32> to vector<8x512xf32>
      %32 = arith.addf %31, %23 : vector<8x512xf32>
      %c0_19 = arith.constant 0 : index
      %c1_20 = arith.constant 1 : index
      %c0_21 = arith.constant 0 : index
      %c0_22 = arith.constant 0 : index
      %33 = vector.load %arg4[%c0_19, %c1_20, %c0_21, %c0_22] : memref<1x3x8x512xf32, #tpu.memory_space<vmem>>, vector<1x1x8x512xf32>
      %34 = vector.shape_cast %33 : vector<1x1x8x512xf32> to vector<8x512xf32>
      %35 = vector.shape_cast %32 : vector<8x512xf32> to vector<1x1x8x512xf32>
      tpu.vector_store %arg4[%c0_19, %c1_20, %c0_21, %c0_22], %35 {strides = array<i32>} : memref<1x3x8x512xf32, #tpu.memory_space<vmem>>, vector<1x1x8x512xf32>,
      %c0_23 = arith.constant 0 : index
      %c2 = arith.constant 2 : index
      %c0_24 = arith.constant 0 : index
      %c0_25 = arith.constant 0 : index
      %36 = vector.load %arg4[%c0_23, %c2, %c0_24, %c0_25] : memref<1x3x8x512xf32, #tpu.memory_space<vmem>>, vector<1x1x8x512xf32>
      %37 = vector.shape_cast %36 : vector<1x1x8x512xf32> to vector<8x512xf32>
      %38 = arith.addf %37, %12 : vector<8x512xf32>
      %c0_26 = arith.constant 0 : index
      %c2_27 = arith.constant 2 : index
      %c0_28 = arith.constant 0 : index
      %c0_29 = arith.constant 0 : index
      %39 = vector.load %arg4[%c0_26, %c2_27, %c0_28, %c0_29] : memref<1x3x8x512xf32, #tpu.memory_space<vmem>>, vector<1x1x8x512xf32>
      %40 = vector.shape_cast %39 : vector<1x1x8x512xf32> to vector<8x512xf32>
      %41 = vector.shape_cast %38 : vector<8x512xf32> to vector<1x1x8x512xf32>
      tpu.vector_store %arg4[%c0_26, %c2_27, %c0_28, %c0_29], %41 {strides = array<i32>} : memref<1x3x8x512xf32, #tpu.memory_space<vmem>>, vector<1x1x8x512xf32>,
    } else {
    }
    %c3_i32_2 = arith.constant 3 : i32
    %8 = arith.cmpi eq, %1, %c3_i32_2 : i32
    %9 = arith.extui %8 : i1 to i32
    %c0_i32_3 = arith.constant 0 : i32
    %10 = arith.cmpi ne, %9, %c0_i32_3 : i32
    scf.if %10 {
      %c0 = arith.constant 0 : index
      %c0_4 = arith.constant 0 : index
      %11 = vector.load %arg2[%c0, %c0_4] : memref<8x512xf32, #tpu.memory_space<vmem>>, vector<8x512xf32>
      %c0_5 = arith.constant 0 : index
      %c0_6 = arith.constant 0 : index
      %12 = vector.load %arg3[%c0_5, %c0_6] : memref<8x512xf32, #tpu.memory_space<vmem>>, vector<8x512xf32>
      %cst = arith.constant 0.000000e+00 : f32
      %13 = vector.broadcast %cst : f32 to vector<8x512xf32>
      %14 = arith.maximumf %11, %13 : vector<8x512xf32>
      %15 = math.absf %11 : vector<8x512xf32>
      %cst_7 = arith.constant 0.000000e+00 : f32
      %16 = vector.broadcast %cst_7 : f32 to vector<8x512xf32>
      %17 = arith.subf %16, %15 : vector<8x512xf32>
      %18 = math.exp %17 : vector<8x512xf32>
      %19 = math.log1p %18 : vector<8x512xf32>
      %20 = arith.addf %14, %19 : vector<8x512xf32>
      %21 = arith.mulf %11, %12 : vector<8x512xf32>
      %22 = arith.subf %20, %21 : vector<8x512xf32>
      %23 = tpu.iota {dimensions = array<i32: 1>} : vector<8x512xi32>
      %c512_i32 = arith.constant 512 : i32
      %24 = arith.muli %1, %c512_i32 : i32
      %25 = vector.broadcast %24 : i32 to vector<8x512xi32>
      %26 = arith.addi %25, %23 : vector<8x512xi32>
      %c2000_i32 = arith.constant 2000 : i32
      %27 = vector.broadcast %c2000_i32 : i32 to vector<8x512xi32>
      %28 = arith.cmpi slt, %26, %27 : vector<8x512xi32>
      %cst_8 = arith.constant 0.000000e+00 : f32
      %29 = vector.broadcast %cst_8 : f32 to vector<8x512xf32>
      %30 = arith.select %28, %22, %29 : vector<8x512xi1>, vector<8x512xf32>
      %cst_9 = arith.constant 0.000000e+00 : f32
      %31 = vector.broadcast %cst_9 : f32 to vector<8x512xf32>
      %32 = arith.select %28, %12, %31 : vector<8x512xi1>, vector<8x512xf32>
      %33 = arith.mulf %30, %32 : vector<8x512xf32>
      %c0_10 = arith.constant 0 : index
      %c0_11 = arith.constant 0 : index
      %c0_12 = arith.constant 0 : index
      %c0_13 = arith.constant 0 : index
      %34 = vector.load %arg4[%c0_10, %c0_11, %c0_12, %c0_13] : memref<1x3x8x512xf32, #tpu.memory_space<vmem>>, vector<1x1x8x512xf32>
      %35 = vector.shape_cast %34 : vector<1x1x8x512xf32> to vector<8x512xf32>
      %36 = arith.addf %35, %30 : vector<8x512xf32>
      %c0_14 = arith.constant 0 : index
      %c0_15 = arith.constant 0 : index
      %c0_16 = arith.constant 0 : index
      %c0_17 = arith.constant 0 : index
      %37 = vector.load %arg4[%c0_14, %c0_15, %c0_16, %c0_17] : memref<1x3x8x512xf32, #tpu.memory_space<vmem>>, vector<1x1x8x512xf32>
      %38 = vector.shape_cast %37 : vector<1x1x8x512xf32> to vector<8x512xf32>
      %39 = vector.shape_cast %36 : vector<8x512xf32> to vector<1x1x8x512xf32>
      tpu.vector_store %arg4[%c0_14, %c0_15, %c0_16, %c0_17], %39 {strides = array<i32>} : memref<1x3x8x512xf32, #tpu.memory_space<vmem>>, vector<1x1x8x512xf32>,
      %c0_18 = arith.constant 0 : index
      %c1 = arith.constant 1 : index
      %c0_19 = arith.constant 0 : index
      %c0_20 = arith.constant 0 : index
      %40 = vector.load %arg4[%c0_18, %c1, %c0_19, %c0_20] : memref<1x3x8x512xf32, #tpu.memory_space<vmem>>, vector<1x1x8x512xf32>
      %41 = vector.shape_cast %40 : vector<1x1x8x512xf32> to vector<8x512xf32>
      %42 = arith.addf %41, %33 : vector<8x512xf32>
      %c0_21 = arith.constant 0 : index
      %c1_22 = arith.constant 1 : index
      %c0_23 = arith.constant 0 : index
      %c0_24 = arith.constant 0 : index
      %43 = vector.load %arg4[%c0_21, %c1_22, %c0_23, %c0_24] : memref<1x3x8x512xf32, #tpu.memory_space<vmem>>, vector<1x1x8x512xf32>
      %44 = vector.shape_cast %43 : vector<1x1x8x512xf32> to vector<8x512xf32>
      %45 = vector.shape_cast %42 : vector<8x512xf32> to vector<1x1x8x512xf32>
      tpu.vector_store %arg4[%c0_21, %c1_22, %c0_23, %c0_24], %45 {strides = array<i32>} : memref<1x3x8x512xf32, #tpu.memory_space<vmem>>, vector<1x1x8x512xf32>,
      %c0_25 = arith.constant 0 : index
      %c2 = arith.constant 2 : index
      %c0_26 = arith.constant 0 : index
      %c0_27 = arith.constant 0 : index
      %46 = vector.load %arg4[%c0_25, %c2, %c0_26, %c0_27] : memref<1x3x8x512xf32, #tpu.memory_space<vmem>>, vector<1x1x8x512xf32>
      %47 = vector.shape_cast %46 : vector<1x1x8x512xf32> to vector<8x512xf32>
      %48 = arith.addf %47, %32 : vector<8x512xf32>
      %c0_28 = arith.constant 0 : index
      %c2_29 = arith.constant 2 : index
      %c0_30 = arith.constant 0 : index
      %c0_31 = arith.constant 0 : index
      %49 = vector.load %arg4[%c0_28, %c2_29, %c0_30, %c0_31] : memref<1x3x8x512xf32, #tpu.memory_space<vmem>>, vector<1x1x8x512xf32>
      %50 = vector.shape_cast %49 : vector<1x1x8x512xf32> to vector<8x512xf32>
      %51 = vector.shape_cast %48 : vector<8x512xf32> to vector<1x1x8x512xf32>
      tpu.vector_store %arg4[%c0_28, %c2_29, %c0_30, %c0_31], %51 {strides = array<i32>} : memref<1x3x8x512xf32, #tpu.memory_space<vmem>>, vector<1x1x8x512xf32>,
    } else {
    }
    return
  }
  func.func @transform_0(%arg0: i32, %arg1: i32) -> (i32, i32) {
    %c2_i32 = arith.constant 2 : i32
    %0 = arith.muli %arg0, %c2_i32 : i32
    %1 = arith.addi %0, %arg1 : i32
    %c0_i32 = arith.constant 0 : i32
    %c0_i32_0 = arith.constant 0 : i32
    return %c0_i32, %1 : i32, i32
  }
  func.func @transform_1(%arg0: i32, %arg1: i32) -> (i32, i32) {
    %c2_i32 = arith.constant 2 : i32
    %0 = arith.muli %arg0, %c2_i32 : i32
    %1 = arith.addi %0, %arg1 : i32
    %c0_i32 = arith.constant 0 : i32
    %c0_i32_0 = arith.constant 0 : i32
    return %c0_i32, %1 : i32, i32
  }
  func.func @transform_2(%arg0: i32, %arg1: i32) -> (i32, i32, i32, i32) {
    %c0_i32 = arith.constant 0 : i32
    %c0_i32_0 = arith.constant 0 : i32
    %c0_i32_1 = arith.constant 0 : i32
    %c0_i32_2 = arith.constant 0 : i32
    return %arg0, %c0_i32, %c0_i32_0, %c0_i32_1 : i32, i32, i32, i32
  }
}

</mosaic_0001>

<bundles_post_ra>
// kernel: tpu_custom_call.1
= control target key start
LH: loop header
LB: loop body
LE: loop exit
PB: predicated region body
PF: predicated region fallthrough
CT: control target
= control target key end

     0   :  { %s1563_s0 = inlined_call_operand.hbm [shape: f32[8,2000], index: 0, kind: input, shape index: {}]   ;;  %s1564_s1 = inlined_call_operand.hbm [shape: f32[8,2000], index: 1, kind: input, shape index: {}]   ;;  %s1565_s2 = inlined_call_operand.hbm [shape: f32[2,3,8,512], index: 2, kind: output, shape index: {}]  }
   0x1   :  { %1572 = sst [smem:[#allocation13_spill]] %s1563_s0 }
   0x2   :  { %7 = vsyncpa [#allocation3], 0 }
   0x3   :  { %9 = vsyncpa [#allocation3 + $0x1], 0 }
   0x4   :  { %10 = vsyncpa [#allocation6], 0 }
   0x5   :  { %12 = vsyncpa [#allocation6 + $0x1], 0 }
   0x6   :  { %13 = vsyncpa [#allocation4], 0 }
   0x7   :  { %15 = vsyncpa [#allocation4 + $0x1], 0  ;;  %s1052_s9 = smov 0   ;;  %s1054_s10 = smov 0  }
   0x8   :  { %s1056_s11 = smov 0   ;;  %s1058_s12 = smov 0  }
   0x9   :  { %s1060_s13 = smov 0   ;;  %s1062_s14 = smov 0  }
   0xa   :  { %s1064_s15 = smov 0   ;;  %s1066_s16 = smov 0  }
   0xb   :  { %s1068_s17 = smov 0   ;;  %s1070_s18 = smov 0  }
   0xc   :  { %s1072_s19 = smov 0  }
   0xd LB: > { %s638_s20 = sadd.s32 4294967295, %s1029_s19   ;;  %s639_s21 = sadd.s32 4294967294, %s1029_s19   ;;  %s1029_s19 = sphi %s1072_s19, %s21_s19   ;;  %s1025_s18 = sphi %s1070_s18, %s1611_s18   ;;  %s1021_s17 = sphi %s1068_s17, %s1610_s17   ;;  %s1017_s16 = sphi %s1066_s16, %s1609_s16   ;;  %s1013_s15 = sphi %s1064_s15, %s1608_s15   ;;  %s1009_s14 = sphi %s1062_s14, %s1607_s14   ;;  %s1005_s13 = sphi %s1060_s13, %s1606_s13   ;;  %s1001_s12 = sphi %s1058_s12, %s1605_s12   ;;  %s997_s11 = sphi %s1056_s11, %s1604_s11   ;;  %s993_s10 = sphi %s1054_s10, %s1603_s10   ;;  %s989_s9 = sphi %s1052_s9, %s1602_s9  }
   0xe   : > { %s30_s22 = sadd.s32 1, %s1021_s17  ;;  %s33_s23 = sadd.s32 1, %s1025_s18 }
   0xf   : > { %p31_p0 = scmp.ge.s32.totalorder %s30_s22, 2  ;;  %s640_s24 = sshll.u32 %s1025_s18, 1 }
  0x10   : > { %s1111_s25 = sadd.s32 %s1021_s17, %s640_s24  ;;  %s44_s26 = sadd.s32 1, %s1009_s14 }
  0x11   : > { %s1613_s22 = smov (%p31_p0, %s30_s22), 0  ;;  %s1615_s23 = smov (!%p31_p0, %s33_s23), %s1025_s18 }
  0x12   : > { %1573 = sst [smem:[#allocation11_spill]] %s1613_s22  ;;  %p51_p1 = scmp.ne.s32.totalorder %s1009_s14, %s1005_s13 }
  0x13   : > { %p52_p2 = scmp.eq.s32.totalorder %s1029_s19, 0  ;;  %p35_p3 = scmp.ge.s32.totalorder %s1615_s23, 2 }
  0x14   : > { %p57_p4 = scmp.ne.s32.totalorder %s1005_s13, %s1001_s12  ;;  %p58_p6 = scmp.eq.s32.totalorder %s638_s20, 0 }
  0x15   : > { %p1121_p5 = por %p52_p2, %p51_p1  ;;  %s1617_s23 = smov (%p35_p3, %s1615_s23), 0 }
  0x16   : > { %1575 = sst [smem:[#allocation12_spill]] %s1617_s23  ;;  %p1127_p7 = por %p58_p6, %p57_p4 }
  0x17   : > { %s100_s29 = sadd.s32 1, %s997_s11  ;;  %s641_s30 = sshll.u32 %s1617_s23, 1 }
  0x18   : > { %s1576_s28 = scalar_select %p1127_p7, 1, 0 }
  0x19   : > { %s97_s3 = ssub.s32 %s1025_s18, %s1617_s23  ;;  %s40_s4 = sadd.s32 %s641_s30, %s1613_s22 }
  0x1a   : > { %p98_p8 = scmp.eq.s32.totalorder %s97_s3, 0  ;;  %s41_s5 = ssub.s32 %s1111_s25, %s40_s4 }
  0x1b   : > { %p110_p9 = scmp.ne.s32.totalorder %s997_s11, %s993_s10  ;;  %p42_p10 = scmp.eq.s32.totalorder %s41_s5, 0 }
  0x1c   : > { %p111_p11 = scmp.eq.s32.totalorder %s638_s20, 3  ;;  %p116_p13 = scmp.ne.s32.totalorder %s993_s10, %s989_s9 }
  0x1d   : > { %s1140_s6 = scalar_select %p98_p8, %s997_s11, %s100_s29  }
  0x1e   : > { %s1143_s7 = scalar_select %p42_p10, %s1009_s14, %s44_s26  }
  0x1f   : > { %p1145_p12 = por %p111_p11, %p110_p9  ;;  %p117_p0 = scmp.eq.s32.totalorder %s639_s21, 3 }
  0x20   : > { %p718_p1 = scmp.lt.s32.totalorder %s1029_s19, 4  ;;  %s1155_s12 = sand.u32 1, %s1009_s14  }
  0x21   : > { %s1577_s8 = scalar_select %p1145_p12, 1, 0 }
  0x22   : > { %p1157_p2 = por %p117_p0, %p116_p13  ;;  %s1566_s24 = sshll.u32 %s1155_s12, 5 }
  0x23   : > { %s1567_s26 = sshll.u32 %s1111_s25, 9  ;;  %s1579_s0 = sld [smem:[#allocation13_spill]] }
  0x24   : > { %s1578_s20 = scalar_select %p1157_p2, 1, 0 }
  0x25   : > { %s141_s21 = scalar_lea.vmem [#allocation2], %s1566_s24  ;;  %p1174_p3 = pnand %p718_p1, %p1121_p5 }
  0x26   : > { %s151_s4 = sshll.u32 %s141_s21, 4  ;;  %s138_s29 = scalar_lea.sflag [#allocation3], %s1155_s12  ;;  %s1178_s4 = int_to_ptr.vmem [resolvable:$true] %s151_s4 }
  0x27   : > { %p845_p9 = pneg %p1174_p3 }
  0x29   : > { %s1168_s3 = scalar_lea.hbm %s1579_s0, %s1567_s26  ;;  %s848_s24 = scalar_lea.hbm %s1579_s0, 2048 }
  0x2a   : > { %s843_s30 = scalar_lea.hbm %s1168_s3, 512  ;;  %p849_p5 = scmp.lt.u32.totalorder %s1168_s3, %s1579_s0 }
  0x2b   : > { %p844_p8 = scmp.ne.s32.totalorder %s1168_s3, %s843_s30  ;;  %p850_p13 = scmp.lt.u32.totalorder %s848_s24, %s843_s30 }
  0x2c   : > { %p852_p1 = scmp.lt.u32.totalorder %s843_s30, %s1168_s3 }
  0x2d   : > { %p846_p10 = pnand %p845_p9, %p844_p8  ;;  %p851_p0 = por %p850_p13, %p849_p5 }
  0x2f   : > { %p847_p11 = pneg %p846_p10  ;;  %p853_p4 = por %p852_p1, %p851_p0 }
  0x31   : > { %p854_p6 = pnand %p853_p4, %p847_p11 }
  0x33   : > { %857 = shalt.err (!%p854_p6)
}
  0x34   : > { %s858_s22 = scalar_lea.vmem %s1178_s4, 512  ;;  %s1031_s27 = smov [#allocation2]  }
  0x35   : > { %p859_p8 = scmp.ne.s32.totalorder %s1178_s4, %s858_s22  ;;  %s863_s21 = sshll.u32 %s1031_s27, 4  ;;  %s864_s21 = int_to_ptr.vmem [resolvable:$false] %s863_s21 }
  0x36   : > { %s865_s23 = scalar_lea.vmem %s864_s21, 1024  ;;  %p866_p12 = scmp.lt.s32.totalorder %s1178_s4, %s864_s21 }
  0x37   : > { %p861_p10 = pnand %p859_p8, %p845_p9  ;;  %p867_p5 = scmp.lt.s32.totalorder %s865_s23, %s858_s22 }
  0x39   : > { %p862_p2 = pneg %p861_p10  ;;  %p868_p13 = por %p867_p5, %p866_p12 }
  0x3b   : > { %p869_p0 = pnand %p868_p13, %p862_p2 }
  0x3d   : > { %872 = shalt.err (!%p869_p0)
}
  0x3e   : > { %710 = dma.hbm_to_vmem [thread:$0]  (!%p1174_p3), %s1168_s3, 512, %s1178_s4, %s138_s29  }
  0x3f   : > { %p1581_p4 = scmp.lt.s32.totalorder %s1029_s19, 5  ;;  %p1582_p6 = scmp.ge.s32.totalorder %s1029_s19, 1 }
  0x40   : > { %s1584_s22 = sshll.u32 %s1111_s25, 9  ;;  %s1585_s21 = sshll.u32 %s1155_s12, 5 }
  0x41   : > { %p1212_p11 = pnand %p1582_p6, %p1581_p4  ;;  %s1221_s27 = scalar_lea.hbm %s1564_s1, %s1584_s22 }
  0x42   : > { %s162_s23 = scalar_lea.vmem [#allocation5], %s1585_s21  ;;  %s159_s3 = scalar_lea.sflag [#allocation6], %s1155_s12 }
  0x43   : > { %s1583_s24 = scalar_select %p1212_p11, 1, 0 }
  0x44   : > { %s172_s0 = sshll.u32 %s162_s23, 4  ;;  %s873_s4 = scalar_lea.hbm %s1221_s27, 512  ;;  %s173_s0 = int_to_ptr.vmem [resolvable:$true] %s172_s0 }
  0x45   : > { %p874_p12 = scmp.ne.s32.totalorder %s1221_s27, %s873_s4  ;;  %s878_s22 = scalar_lea.hbm %s1564_s1, 2048 }
  0x46   : > { %p879_p8 = scmp.lt.u32.totalorder %s1221_s27, %s1564_s1  ;;  %p880_p10 = scmp.lt.u32.totalorder %s878_s22, %s873_s4 }
  0x47   : > { %p876_p2 = pnand %p874_p12, %p845_p9  ;;  %p882_p13 = scmp.lt.u32.totalorder %s873_s4, %s1221_s27 }
  0x48   : > { %p881_p5 = por %p880_p10, %p879_p8 }
  0x49   : > { %p877_p1 = pneg %p876_p2 }
  0x4a   : > { %p883_p0 = por %p882_p13, %p881_p5 }
  0x4c   : > { %p884_p4 = pnand %p883_p0, %p877_p1 }
  0x4e   : > { %887 = shalt.err (!%p884_p4)
}
  0x4f   : > { %s888_s12 = scalar_lea.vmem %s173_s0, 512  ;;  %s1032_s21 = smov [#allocation5]  }
  0x50   : > { %p889_p6 = scmp.ne.s32.totalorder %s173_s0, %s888_s12  ;;  %s893_s23 = sshll.u32 %s1032_s21, 4  ;;  %s894_s23 = int_to_ptr.vmem [resolvable:$false] %s893_s23 }
  0x51   : > { %s895_s25 = scalar_lea.vmem %s894_s23, 1024  ;;  %p896_p7 = scmp.lt.s32.totalorder %s173_s0, %s894_s23 }
  0x52   : > { %p891_p12 = pnand %p889_p6, %p845_p9  ;;  %p897_p11 = scmp.lt.s32.totalorder %s895_s25, %s888_s12 }
  0x54   : > { %p892_p2 = pneg %p891_p12  ;;  %p898_p8 = por %p897_p11, %p896_p7 }
  0x56   : > { %p899_p10 = pnand %p898_p8, %p892_p2 }
  0x58   : > { %902 = shalt.err (!%p899_p10)
}
  0x59   : > { %713 = dma.hbm_to_vmem [thread:$0]  (!%p1174_p3), %s1221_s27, 512, %s173_s0, %s159_s3  }
  0x5a   : > { %p1586_p1 = scmp.ne.s32.totalorder %s1583_s24, 0 }
  0x5b   : > { %s183_s4 = sand.u32 (!%p1586_p1), 1, %s1005_s13   ;;  %p1587_p9 = scmp.ne.s32.totalorder (!%p1586_p1), %s1576_s28, 0 }
  0x5c   : > { %181 = sbr.rel (%p1586_p1) target bundleno = 234 (0xea), region = 28  ;;  %s655_s29 = sshll.u32 (!%p1586_p1), %s183_s4, 5 }
  0x5d   : > { %s184_s22 = scalar_lea.sflag (!%p1586_p1), [#allocation3], %s183_s4  ;;  %s1248_s26 = scalar_lea.vmem (!%p1586_p1), [#allocation2], %s655_s29 }
  0x63   : > { %976 = dma.done.wait (%p1587_p9), %s184_s22, 512  }
  0x64   : > { %978 = vsyncadd (%p1587_p9), %s184_s22, 4294966784  ;;  %s193_s30 = scalar_lea.sflag [#allocation6], %s183_s4  ;;  %s1254_s5 = scalar_lea.vmem [#allocation5], %s655_s29 }
  0x65   : > { %980 = dma.done.wait (%p1587_p9), %s193_s30, 512  }
  0x66   : > { %982 = vsyncadd (%p1587_p9), %s193_s30, 4294966784  ;;  %s219_s0 = sand.u32 1, %s993_s10   ;;  %s657_s24 = sshll.u32 %s1017_s16, 1 }
  0x67   : > { %s699_s27 = smul.u32 96, %s219_s0  ;;  %s1265_s3 = sadd.s32 %s1013_s15, %s657_s24 }
  0x68   : > { %p658_p7 = scmp.ne.s32.totalorder %s1013_s15, 0 }
  0x69   : > { %s1267_s12 = scalar_lea.vmem [#allocation7], %s699_s27  ;;  %v1033_v0 = vmov (!%p658_p7), 0.0  }
  0x6a   : > { %233 = sbr.rel (%p658_p7) target bundleno = 113 (0x71), region = 40  ;;  %234 = vst [vmem:[%s1267_s12] sm:$0xff] (!%p658_p7), %v1033_v0  ;;  %235 = vst [vmem:[%s1267_s12 + $0x8] sm:$0xff] (!%p658_p7), %v1033_v0 }
  0x6b   : > { %236 = vst [vmem:[%s1267_s12 + $0x10] sm:$0xff] (!%p658_p7), %v1033_v0  ;;  %237 = vst [vmem:[%s1267_s12 + $0x18] sm:$0xff] (!%p658_p7), %v1033_v0 }
  0x6c   : > { %238 = vst [vmem:[%s1267_s12 + $0x20] sm:$0xff] (!%p658_p7), %v1033_v0  ;;  %239 = vst [vmem:[%s1267_s12 + $0x28] sm:$0xff] (!%p658_p7), %v1033_v0 }
  0x6d   : > { %240 = vst [vmem:[%s1267_s12 + $0x30] sm:$0xff] (!%p658_p7), %v1033_v0  ;;  %241 = vst [vmem:[%s1267_s12 + $0x38] sm:$0xff] (!%p658_p7), %v1033_v0 }
  0x6e   : > { %242 = vst [vmem:[%s1267_s12 + $0x40] sm:$0xff] (!%p658_p7), %v1033_v0  ;;  %243 = vst [vmem:[%s1267_s12 + $0x48] sm:$0xff] (!%p658_p7), %v1033_v0 }
  0x6f   : > { %244 = vst [vmem:[%s1267_s12 + $0x50] sm:$0xff] (!%p658_p7), %v1033_v0  ;;  %245 = vst [vmem:[%s1267_s12 + $0x58] sm:$0xff] (!%p658_p7), %v1033_v0 }
  0x71 PF: > { %p659_p3 = scmp.ge.s32.totalorder %s1265_s3, 3 }
  0x72   : > { %v1284_v1 = vld [vmem:[%s1248_s26] sm:$0xff] (!%p659_p3)  ;;  %v1288_v3 = vld [vmem:[%s1248_s26 + $0x8] sm:$0xff] (!%p659_p3)  ;;  %v1292_v5 = vld [vmem:[%s1248_s26 + $0x10] sm:$0xff] (!%p659_p3) }
  0x73   : > { %249 = sbr.rel (%p659_p3) target bundleno = 160 (0xa0), region = 44  ;;  %v262_v2 = vand.u32 (!%p659_p3), 2147483647, %v1284_v1  ;;  %v263_v4 = vand.u32 (!%p659_p3), 2147483647, %v1288_v3  ;;  %v1296_v8 = vld [vmem:[%s1248_s26 + $0x18] sm:$0xff] (!%p659_p3) }
  0x74   : > { %v264_v7 = vand.u32 (!%p659_p3), 2147483647, %v1292_v5  ;;  %v265_v10 = vand.u32 (!%p659_p3), 2147483647, %v1296_v8  ;;  %v1300_v11 = vld [vmem:[%s1254_s5] sm:$0xff] (!%p659_p3)  ;;  %v1303_v13 = vld [vmem:[%s1254_s5 + $0x8] sm:$0xff] (!%p659_p3) }
  0x75   : > { %v266_v6 = vsub.f32 (!%p659_p3), 0.0, %v262_v2  ;;  %v267_v9 = vsub.f32 (!%p659_p3), 0.0, %v263_v4  ;;  %v668_v17 = vld [vmem:[%s1267_s12 + $0x40] sm:$0xff] (!%p659_p3)  ;;  %v669_v18 = vld [vmem:[%s1267_s12 + $0x48] sm:$0xff] (!%p659_p3)  ;;  %v1309_v20 = vld [vmem:[%s1254_s5 + $0x10] sm:$0xff] (!%p659_p3)  ;;  %v258_v47 = vmax.f32 (!%p659_p3), %v1284_v1, 0.0  ;;  %v318_v52 = vmul.f32 (!%p659_p3), %v1300_v11, %v1284_v1 }
  0x76   : > { %v268_v14 = vsub.f32 (!%p659_p3), 0.0, %v264_v7  ;;  %v269_v16 = vsub.f32 (!%p659_p3), 0.0, %v265_v10  ;;  %v670_v19 = vld [vmem:[%s1267_s12 + $0x50] sm:$0xff] (!%p659_p3)  ;;  %v1312_v22 = vld [vmem:[%s1254_s5 + $0x18] sm:$0xff] (!%p659_p3)  ;;  %v360_v23 = vadd.f32 (!%p659_p3), %v668_v17, %v1300_v11  ;;  %v361_v24 = vadd.f32 (!%p659_p3), %v669_v18, %v1303_v13  ;;  %v331_v17 = vld [vmem:[%s1267_s12 + $0x8] sm:$0xff] (!%p659_p3) }
  0x77   : > { %v270_v12 = vmul.f32 (!%p659_p3), 1.442695, %v266_v6  ;;  %v272_v15 = vmul.f32 (!%p659_p3), 1.442695, %v267_v9  ;;  %v671_v25 = vld [vmem:[%s1267_s12 + $0x58] sm:$0xff] (!%p659_p3)  ;;  %v362_v27 = vadd.f32 (!%p659_p3), %v670_v19, %v1309_v20  ;;  %v259_v57 = vmax.f32 (!%p659_p3), %v1288_v3, 0.0 }
  0x78   : > { %v274_v21 = vmul.f32 (!%p659_p3), 1.442695, %v268_v14  ;;  %v276_v26 = vmul.f32 (!%p659_p3), 1.442695, %v269_v16  ;;  %v363_v28 = vadd.f32 (!%p659_p3), %v671_v25, %v1312_v22  ;;  %672 = vst [vmem:[%s1267_s12 + $0x40] sm:$0xff] (!%p659_p3), %v360_v23  ;;  %673 = vst [vmem:[%s1267_s12 + $0x48] sm:$0xff] (!%p659_p3), %v361_v24  ;;  %v319_v62 = vmul.f32 (!%p659_p3), %v1303_v13, %v1288_v3 }
  0x79   : > { %811 = vpow2.f32 (!%p659_p3), %v270_v12  ;;  %674 = vst [vmem:[%s1267_s12 + $0x50] sm:$0xff] (!%p659_p3), %v362_v27  ;;  %v260_v63 = vmax.f32 (!%p659_p3), %v1292_v5, 0.0  ;;  %v320_v4 = vmul.f32 (!%p659_p3), %v1309_v20, %v1292_v5  ;;  %v261_v10 = vmax.f32 (!%p659_p3), %v1296_v8, 0.0  ;;  %v330_v12 = vld [vmem:[%s1267_s12] sm:$0xff] (!%p659_p3)  ;;  %v332_v23 = vld [vmem:[%s1267_s12 + $0x10] sm:$0xff] (!%p659_p3) }
  0x7a   : > { %813 = vpow2.f32 %v272_v15  ;;  %675 = vst [vmem:[%s1267_s12 + $0x58] sm:$0xff] %v363_v28  ;;  %v321_v19 = vmul.f32 %v1312_v22, %v1296_v8  ;;  %v660_v25 = vld [vmem:[%s1267_s12 + $0x20] sm:$0xff]  ;;  %v662_v8 = vld [vmem:[%s1267_s12 + $0x30] sm:$0xff] }
  0x7b   : > { %815 = vpow2.f32 %v274_v21 }
  0x7c   : > { %817 = vpow2.f32 %v276_v26 }
  0x83   : > { %v812_v29 = vpop.eup %811 }
  0x84   : > { %v814_v30 = vpop.eup %813  ;;  %v278_v31 = vadd.f32 1.0, %v812_v29  ;;  %v281_v36 = vmul.f32 -0.5, %v812_v29  ;;  %v284_v42 = vand.u32 2147483647, %v812_v29 }
  0x85   : > { %v816_v32 = vpop.eup %815  ;;  %v287_v33 = vadd.f32 1.0, %v814_v30  ;;  %v290_v37 = vmul.f32 -0.5, %v814_v30  ;;  %v293_v44 = vand.u32 2147483647, %v814_v30 }
  0x86   : > { %v818_v34 = vpop.eup %817  ;;  %819 = vlog2.f32 %v278_v31  ;;  %v296_v35 = vadd.f32 1.0, %v816_v32  ;;  %v299_v39 = vmul.f32 -0.5, %v816_v32  ;;  %v282_v40 = vadd.f32 1.0, %v281_v36 }
  0x87   : > { %821 = vlog2.f32 %v287_v33  ;;  %v305_v38 = vadd.f32 1.0, %v818_v34  ;;  %v308_v41 = vmul.f32 -0.5, %v818_v34  ;;  %v291_v43 = vadd.f32 1.0, %v290_v37 }
  0x88   : > { %823 = vlog2.f32 %v296_v35  ;;  %v300_v45 = vadd.f32 1.0, %v299_v39  ;;  %v302_v46 = vand.u32 2147483647, %v816_v32  ;;  %v283_v48 = vmul.f32 %v812_v29, %v282_v40 }
  0x89   : > { %825 = vlog2.f32 %v305_v38  ;;  %v309_v49 = vadd.f32 1.0, %v308_v41  ;;  %vm1324_vm0 = vcmp.lt.f32.partialorder %v284_v42, 0.0004427343  ;;  %v292_v53 = vmul.f32 %v814_v30, %v291_v43  ;;  %v661_v30 = vld [vmem:[%s1267_s12 + $0x28] sm:$0xff] }
  0x8a   : > { %v311_v54 = vand.u32 2147483647, %v818_v34  ;;  %vm1331_vm1 = vcmp.lt.f32.partialorder %v293_v44, 0.0004427343  ;;  %v301_v59 = vmul.f32 %v816_v32, %v300_v45  ;;  %vm1338_vm2 = vcmp.lt.f32.partialorder %v302_v46, 0.0004427343 }
  0x8b   : > { %v310_v6 = vmul.f32 %v818_v34, %v309_v49  ;;  %v333_v32 = vld [vmem:[%s1267_s12 + $0x18] sm:$0xff] }
  0x8c   : > { %vm312_vm3 = vcmp.lt.f32.partialorder %v311_v54, 0.0004427343 }
  0x90   : > { %v820_v50 = vpop.eup %819 }
  0x91   : > { %v822_v55 = vpop.eup %821  ;;  %v280_v56 = vmul.f32 0.6931472, %v820_v50 }
  0x92   : > { %v824_v60 = vpop.eup %823  ;;  %v289_v61 = vmul.f32 0.6931472, %v822_v55 }
  0x93   : > { %v286_v1 = vsel %vm1324_vm0, %v283_v48, %v280_v56  ;;  %v298_v2 = vmul.f32 0.6931472, %v824_v60  ;;  %v826_v7 = vpop.eup %825 }
  0x94   : > { %v314_v9 = vadd.f32 %v286_v1, %v258_v47  ;;  %v295_v3 = vsel %vm1331_vm1, %v292_v53, %v289_v61  ;;  %v307_v16 = vmul.f32 0.6931472, %v826_v7 }
  0x95   : > { %v315_v14 = vadd.f32 %v295_v3, %v259_v57  ;;  %v304_v15 = vsel %vm1338_vm2, %v301_v59, %v298_v2 }
  0x96   : > { %v322_v5 = vsub.f32 %v314_v9, %v318_v52  ;;  %v316_v18 = vadd.f32 %v304_v15, %v260_v63  ;;  %v313_v24 = vsel %vm312_vm3, %v310_v6, %v307_v16 }
  0x97   : > { %v323_v21 = vsub.f32 %v315_v14, %v319_v62  ;;  %v317_v28 = vadd.f32 %v313_v24, %v261_v10 }
  0x98   : > { %v334_v26 = vadd.f32 %v330_v12, %v322_v5  ;;  %v324_v27 = vsub.f32 %v316_v18, %v320_v4  ;;  %v326_v29 = vmul.f32 %v322_v5, %v1300_v11  ;;  %v663_v11 = vld [vmem:[%s1267_s12 + $0x38] sm:$0xff] }
  0x99   : > { %v335_v31 = vadd.f32 %v331_v17, %v323_v21  ;;  %v327_v33 = vmul.f32 %v323_v21, %v1303_v13  ;;  %v325_v35 = vsub.f32 %v317_v28, %v321_v19 }
  0x9a   : > { %338 = vst [vmem:[%s1267_s12] sm:$0xff] %v334_v26  ;;  %v336_v34 = vadd.f32 %v332_v23, %v324_v27  ;;  %v347_v36 = vadd.f32 %v660_v25, %v326_v29  ;;  %v328_v37 = vmul.f32 %v324_v27, %v1309_v20 }
  0x9b   : > { %339 = vst [vmem:[%s1267_s12 + $0x8] sm:$0xff] %v335_v31  ;;  %v348_v38 = vadd.f32 %v661_v30, %v327_v33  ;;  %v337_v39 = vadd.f32 %v333_v32, %v325_v35  ;;  %v329_v41 = vmul.f32 %v325_v35, %v1312_v22 }
  0x9c   : > { %340 = vst [vmem:[%s1267_s12 + $0x10] sm:$0xff] %v336_v34  ;;  %664 = vst [vmem:[%s1267_s12 + $0x20] sm:$0xff] %v347_v36  ;;  %v349_v40 = vadd.f32 %v662_v8, %v328_v37 }
  0x9d   : > { %665 = vst [vmem:[%s1267_s12 + $0x28] sm:$0xff] %v348_v38  ;;  %341 = vst [vmem:[%s1267_s12 + $0x18] sm:$0xff] %v337_v39  ;;  %v350_v13 = vadd.f32 %v663_v11, %v329_v41 }
  0x9e   : > { %666 = vst [vmem:[%s1267_s12 + $0x30] sm:$0xff] %v349_v40 }
  0x9f   : > { %667 = vst [vmem:[%s1267_s12 + $0x38] sm:$0xff] %v350_v13 }
  0xa0 PF: > { %p676_p11 = scmp.ne.s32.totalorder %s1265_s3, 3 }
  0xa1   : > { %v1375_v20 = vld [vmem:[%s1248_s26] sm:$0xff] (!%p676_p11)  ;;  %v448_v42 = vlaneseq (!%p676_p11)  ;;  %s677_s15 = sshll.u32 (!%p676_p11), %s1265_s3, 9  ;;  %v1380_v44 = vld [vmem:[%s1248_s26 + $0x8] sm:$0xff] (!%p676_p11)  ;;  %v1384_v47 = vld [vmem:[%s1248_s26 + $0x10] sm:$0xff] (!%p676_p11) }
  0xa2   : > { %371 = sbr.rel (%p676_p11) target bundleno = 208 (0xd0), region = 48  ;;  %v384_v22 = vand.u32 (!%p676_p11), 2147483647, %v1375_v20  ;;  %v454_v43 = vstv (!%p676_p11), %s677_s15  ;;  %v385_v46 = vand.u32 (!%p676_p11), 2147483647, %v1380_v44  ;;  %v1388_v50 = vld [vmem:[%s1248_s26 + $0x18] sm:$0xff] (!%p676_p11) }
  0xa3   : > { %v449_v45 = vand.u32 (!%p676_p11), 127, %v448_v42  ;;  %v386_v49 = vand.u32 (!%p676_p11), 2147483647, %v1384_v47  ;;  %v387_v57 = vand.u32 (!%p676_p11), 2147483647, %v1388_v50  ;;  %v376_v1 = vld [vmem:[%s1254_s5] sm:$0xff] (!%p676_p11) }
  0xa4   : > { %v388_v48 = vsub.f32 (!%p676_p11), 0.0, %v384_v22  ;;  %v389_v52 = vsub.f32 (!%p676_p11), 0.0, %v385_v46  ;;  %v1402_v2 = vld [vmem:[%s1254_s5 + $0x8] sm:$0xff] (!%p676_p11)  ;;  %v378_v7 = vld [vmem:[%s1254_s5 + $0x10] sm:$0xff] (!%p676_p11)  ;;  %v1428_v18 = vld [vmem:[%s1254_s5 + $0x18] sm:$0xff] (!%p676_p11)  ;;  %v380_v39 = vmax.f32 (!%p676_p11), %v1375_v20, 0.0  ;;  %v440_v22 = vmul.f32 (!%p676_p11), %v376_v1, %v1375_v20 }
  0xa5   : > { %v1390_v51 = vadd.s32 (!%p676_p11), %v454_v43, %v449_v45  ;;  %v450_v53 = vadd.s32 (!%p676_p11), 128, %v449_v45  ;;  %v451_v54 = vadd.s32 (!%p676_p11), 256, %v449_v45  ;;  %v390_v56 = vsub.f32 (!%p676_p11), 0.0, %v386_v49  ;;  %v686_v63 = vld [vmem:[%s1267_s12 + $0x40] sm:$0xff] (!%p676_p11)  ;;  %v687_v0 = vld [vmem:[%s1267_s12 + $0x48] sm:$0xff] (!%p676_p11) }
  0xa6   : > { %v392_v55 = vmul.f32 (!%p676_p11), 1.442695, %v388_v48  ;;  %v394_v58 = vmul.f32 (!%p676_p11), 1.442695, %v389_v52  ;;  %v391_v62 = vsub.f32 (!%p676_p11), 0.0, %v387_v57  ;;  %v452_v4 = vadd.s32 (!%p676_p11), 384, %v449_v45 }
  0xa7   : > { %vm459_vm4 = vcmp.lt.s32.totalorder (!%p676_p11), %v1390_v51, 2000  ;;  %v1394_v59 = vadd.s32 (!%p676_p11), %v454_v43, %v450_v53  ;;  %v1396_v60 = vadd.s32 (!%p676_p11), %v454_v43, %v451_v54  ;;  %v396_v61 = vmul.f32 (!%p676_p11), 1.442695, %v390_v56  ;;  %v688_v6 = vld [vmem:[%s1267_s12 + $0x50] sm:$0xff] (!%p676_p11)  ;;  %v689_v17 = vld [vmem:[%s1267_s12 + $0x58] sm:$0xff] (!%p676_p11) }
  0xa8   : > { %827 = vpow2.f32 (!%p676_p11), %v392_v55  ;;  %v398_v9 = vmul.f32 (!%p676_p11), 1.442695, %v391_v62  ;;  %v1410_v3 = vsel (!%p676_p11), %vm459_vm4, %v376_v1, 0.0  ;;  %v1417_v12 = vadd.s32 (!%p676_p11), %v454_v43, %v452_v4 }
  0xa9   : > { %829 = vpow2.f32 %v394_v58  ;;  %vm460_vm5 = vcmp.lt.s32.totalorder %v1394_v59, 2000  ;;  %vm461_vm6 = vcmp.lt.s32.totalorder %v1396_v60, 2000  ;;  %v505_v15 = vadd.f32 %v686_v63, %v1410_v3 }
  0xaa   : > { %831 = vpow2.f32 %v396_v61  ;;  %v1415_v10 = vsel %vm460_vm5, %v1402_v2, 0.0  ;;  %v1421_v14 = vsel %vm461_vm6, %v378_v7, 0.0  ;;  %vm462_vm7 = vcmp.lt.s32.totalorder %v1417_v12, 2000 }
  0xab   : > { %v506_v16 = vadd.f32 %v687_v0, %v1415_v10  ;;  %833 = vpow2.f32 %v398_v9  ;;  %v507_v5 = vadd.f32 %v688_v6, %v1421_v14  ;;  %690 = vst [vmem:[%s1267_s12 + $0x40] sm:$0xff] %v505_v15  ;;  %v1436_v19 = vsel %vm462_vm7, %v1428_v18, 0.0  ;;  %v475_v15 = vld [vmem:[%s1267_s12] sm:$0xff] }
  0xac   : > { %v508_v21 = vadd.f32 %v689_v17, %v1436_v19  ;;  %v381_v49 = vmax.f32 %v1380_v44, 0.0  ;;  %v441_v56 = vmul.f32 %v1402_v2, %v1380_v44  ;;  %v382_v57 = vmax.f32 %v1384_v47, 0.0 }
  0xad   : > { %691 = vst [vmem:[%s1267_s12 + $0x48] sm:$0xff] %v506_v16  ;;  %692 = vst [vmem:[%s1267_s12 + $0x50] sm:$0xff] %v507_v5  ;;  %v442_v61 = vmul.f32 %v378_v7, %v1384_v47  ;;  %v383_v44 = vmax.f32 %v1388_v50, 0.0  ;;  %v443_v47 = vmul.f32 %v1428_v18, %v1388_v50  ;;  %v476_v5 = vld [vmem:[%s1267_s12 + $0x8] sm:$0xff] }
  0xae   : > { %693 = vst [vmem:[%s1267_s12 + $0x58] sm:$0xff] %v508_v21  ;;  %v679_v18 = vld [vmem:[%s1267_s12 + $0x28] sm:$0xff] }
  0xb2   : > { %v828_v23 = vpop.eup %827 }
  0xb3   : > { %v830_v24 = vpop.eup %829  ;;  %v400_v25 = vadd.f32 1.0, %v828_v23  ;;  %v403_v30 = vmul.f32 -0.5, %v828_v23  ;;  %v406_v35 = vand.u32 2147483647, %v828_v23 }
  0xb4   : > { %v832_v26 = vpop.eup %831  ;;  %v409_v27 = vadd.f32 1.0, %v830_v24  ;;  %v412_v31 = vmul.f32 -0.5, %v830_v24  ;;  %v415_v37 = vand.u32 2147483647, %v830_v24 }
  0xb5   : > { %835 = vlog2.f32 %v400_v25  ;;  %v418_v28 = vadd.f32 1.0, %v832_v26  ;;  %v834_v29 = vpop.eup %833  ;;  %v421_v33 = vmul.f32 -0.5, %v832_v26  ;;  %v404_v8 = vadd.f32 1.0, %v403_v30 }
  0xb6   : > { %837 = vlog2.f32 %v409_v27  ;;  %v427_v32 = vadd.f32 1.0, %v834_v29  ;;  %v430_v34 = vmul.f32 -0.5, %v834_v29  ;;  %v413_v36 = vadd.f32 1.0, %v412_v31  ;;  %v478_v31 = vld [vmem:[%s1267_s12 + $0x18] sm:$0xff] }
  0xb7   : > { %839 = vlog2.f32 %v418_v28  ;;  %v422_v38 = vadd.f32 1.0, %v421_v33  ;;  %v424_v11 = vand.u32 2147483647, %v832_v26  ;;  %v405_v40 = vmul.f32 %v828_v23, %v404_v8  ;;  %v680_v33 = vld [vmem:[%s1267_s12 + $0x30] sm:$0xff] }
  0xb8   : > { %841 = vlog2.f32 %v427_v32  ;;  %v431_v41 = vadd.f32 1.0, %v430_v34  ;;  %vm1442_vm8 = vcmp.lt.f32.partialorder %v406_v35, 0.0004427343  ;;  %v414_v43 = vmul.f32 %v830_v24, %v413_v36  ;;  %v477_v24 = vld [vmem:[%s1267_s12 + $0x10] sm:$0xff]  ;;  %v681_v35 = vld [vmem:[%s1267_s12 + $0x38] sm:$0xff] }
  0xb9   : > { %v433_v45 = vand.u32 2147483647, %v834_v29  ;;  %vm1448_vm9 = vcmp.lt.f32.partialorder %v415_v37, 0.0004427343  ;;  %v423_v53 = vmul.f32 %v832_v26, %v422_v38  ;;  %vm425_vm10 = vcmp.lt.f32.partialorder %v424_v11, 0.0004427343 }
  0xba   : > { %v432_v62 = vmul.f32 %v834_v29, %v431_v41  ;;  %v678_v26 = vld [vmem:[%s1267_s12 + $0x20] sm:$0xff] }
  0xbb   : > { %vm434_vm11 = vcmp.lt.f32.partialorder %v433_v45, 0.0004427343 }
  0xbf   : > { %v836_v13 = vpop.eup %835 }
  0xc0   : > { %v838_v46 = vpop.eup %837  ;;  %v402_v48 = vmul.f32 0.6931472, %v836_v13 }
  0xc1   : > { %v840_v54 = vpop.eup %839  ;;  %v411_v55 = vmul.f32 0.6931472, %v838_v46 }
  0xc2   : > { %v408_v20 = vsel %vm1442_vm8, %v405_v40, %v402_v48  ;;  %v420_v58 = vmul.f32 0.6931472, %v840_v54  ;;  %v842_v63 = vpop.eup %841 }
  0xc3   : > { %v436_v0 = vadd.f32 %v408_v20, %v380_v39  ;;  %v417_v1 = vsel %vm1448_vm9, %v414_v43, %v411_v55  ;;  %v429_v6 = vmul.f32 0.6931472, %v842_v63 }
  0xc4   : > { %v437_v2 = vadd.f32 %v417_v1, %v381_v49  ;;  %v426_v4 = vsel %vm425_vm10, %v423_v53, %v420_v58 }
  0xc5   : > { %v444_v9 = vsub.f32 %v436_v0, %v440_v22  ;;  %v438_v16 = vadd.f32 %v426_v4, %v382_v57  ;;  %v435_v17 = vsel %vm434_vm11, %v432_v62, %v429_v6 }
  0xc6   : > { %v445_v7 = vsub.f32 %v437_v2, %v441_v56  ;;  %v439_v25 = vadd.f32 %v435_v17, %v383_v44 }
  0xc7   : > { %v463_v21 = vsel %vm459_vm4, %v444_v9, 0.0  ;;  %v446_v23 = vsub.f32 %v438_v16, %v442_v61 }
  0xc8   : > { %v479_v27 = vadd.f32 %v475_v15, %v463_v21  ;;  %v464_v28 = vsel %vm460_vm5, %v445_v7, 0.0  ;;  %v471_v50 = vmul.f32 %v1410_v3, %v463_v21  ;;  %v447_v30 = vsub.f32 %v439_v25, %v443_v47 }
  0xc9   : > { %v480_v29 = vadd.f32 %v476_v5, %v464_v28  ;;  %v465_v51 = vsel %vm461_vm6, %v446_v23, 0.0  ;;  %v472_v32 = vmul.f32 %v1415_v10, %v464_v28 }
  0xca   : > { %483 = vst [vmem:[%s1267_s12] sm:$0xff] %v479_v27  ;;  %v481_v59 = vadd.f32 %v477_v24, %v465_v51  ;;  %v492_v8 = vadd.f32 %v678_v26, %v471_v50  ;;  %v473_v3 = vmul.f32 %v1421_v14, %v465_v51  ;;  %v466_v60 = vsel %vm462_vm7, %v447_v30, 0.0 }
  0xcb   : > { %484 = vst [vmem:[%s1267_s12 + $0x8] sm:$0xff] %v480_v29  ;;  %v493_v34 = vadd.f32 %v679_v18, %v472_v32  ;;  %v482_v36 = vadd.f32 %v478_v31, %v466_v60  ;;  %v474_v10 = vmul.f32 %v1436_v19, %v466_v60 }
  0xcc   : > { %485 = vst [vmem:[%s1267_s12 + $0x10] sm:$0xff] %v481_v59  ;;  %682 = vst [vmem:[%s1267_s12 + $0x20] sm:$0xff] %v492_v8  ;;  %v494_v37 = vadd.f32 %v680_v33, %v473_v3 }
  0xcd   : > { %683 = vst [vmem:[%s1267_s12 + $0x28] sm:$0xff] %v493_v34  ;;  %486 = vst [vmem:[%s1267_s12 + $0x18] sm:$0xff] %v482_v36  ;;  %v495_v38 = vadd.f32 %v681_v35, %v474_v10 }
  0xce   : > { %684 = vst [vmem:[%s1267_s12 + $0x30] sm:$0xff] %v494_v37 }
  0xcf   : > { %685 = vst [vmem:[%s1267_s12 + $0x38] sm:$0xff] %v495_v38 }
  0xd0 PF: > { %s700_s28 = smul.u32 1536, %s1017_s16  ;;  %s527_s21 = sshll.u32 %s1267_s12, 4  ;;  %s1498_s21 = int_to_ptr.vmem [resolvable:$true] %s527_s21 }
  0xd1   : > { %s1502_s29 = scalar_lea.sflag [#allocation4], %s219_s0  ;;  %s903_s22 = scalar_lea.vmem %s1498_s21, 1536 }
  0xd2   : > { %s1496_s4 = scalar_lea.hbm %s1565_s2, %s700_s28  ;;  %p904_p5 = scmp.ne.s32.totalorder %s1498_s21, %s903_s22 }
  0xd3   : > { %p1598_p13 = scmp.ne.s32.totalorder %s1577_s8, 0  ;;  %s1034_s16 = smov [#allocation7]  }
  0xd4   : > { %s907_s26 = sshll.u32 %s1034_s16, 4  ;;  %s908_s26 = int_to_ptr.vmem [resolvable:$false] %s907_s26 }
  0xd5   : > { %p905_p0 = pnand %p904_p5, %p1598_p13  ;;  %s909_s30 = scalar_lea.vmem %s908_s26, 3072 }
  0xd6   : > { %p910_p6 = scmp.lt.s32.totalorder %s1498_s21, %s908_s26  ;;  %p911_p12 = scmp.lt.s32.totalorder %s909_s30, %s903_s22 }
  0xd7   : > { %p906_p4 = pneg %p905_p0 }
  0xd8   : > { %p912_p2 = por %p911_p12, %p910_p6 }
  0xda   : > { %p913_p8 = pnand %p912_p2, %p906_p4 }
  0xdc   : > { %916 = shalt.err (!%p913_p8)
}
  0xdd   : > { %s917_s5 = scalar_lea.hbm %s1496_s4, 1536  ;;  %s921_s27 = scalar_lea.hbm %s1565_s2, 3072 }
  0xde   : > { %p918_p10 = scmp.ne.s32.totalorder %s1496_s4, %s917_s5  ;;  %p922_p7 = scmp.lt.u32.totalorder %s1496_s4, %s1565_s2 }
  0xdf   : > { %p923_p3 = scmp.lt.u32.totalorder %s921_s27, %s917_s5  ;;  %p925_p5 = scmp.lt.u32.totalorder %s917_s5, %s1496_s4 }
  0xe0   : > { %p919_p1 = pnand %p918_p10, %p1598_p13 }
  0xe1   : > { %p924_p11 = por %p923_p3, %p922_p7 }
  0xe2   : > { %p920_p9 = pneg %p919_p1 }
  0xe3   : > { %p926_p0 = por %p925_p5, %p924_p11 }
  0xe5   : > { %p927_p4 = pnand %p926_p0, %p920_p9 }
  0xe7   : > { %930 = shalt.err (!%p927_p4)
}
  0xe8   : > { %s1035_s15 = smov 512   ;;  %s1036_s28 = smov 32  }
  0xe9   : > { %705 = dma.vmem_to_hbm [thread:$0]  (%p1598_p13), %s1498_s21, 1536, %s1496_s4, %s1502_s29, %s1035_s15, %s1035_s15, %s1036_s28  }
  0xea PF: > { %p719_p6 = scmp.ge.s32.totalorder %s1029_s19, 2  ;;  %s542_s23 = sand.u32 1, %s989_s9  }
  0xeb   : > { %p1599_p12 = scmp.ne.s32.totalorder %s1578_s20, 0  ;;  %s543_s25 = scalar_lea.sflag [#allocation4], %s542_s23 }
  0xed   : > { %p715_p2 = pnand %p719_p6, %p1599_p12 }
  0xef   : > { %984 = dma.done.wait (!%p715_p2), %s543_s25, 1536  }
  0xf0   : > { %986 = vsyncadd (!%p715_p2), %s543_s25, 4294965760  ;;  %s21_s19 = sadd.s32 1, %s1029_s19   ;;  %s1600_s8 = sld [smem:[#allocation11_spill]] }
  0xf1   : > { %p18_p8 = scmp.ge.s32.totalorder %s21_s19, 6   ;;  %s1601_s21 = sld [smem:[#allocation12_spill]] }
  0xf2   : > { %s1602_s9 = smov %s993_s10  ;;  %s1603_s10 = smov %s997_s11 }
  0xf3   : > { %s1604_s11 = smov %s1140_s6  ;;  %s1605_s12 = smov %s1005_s13 }
  0xf4   : > { %s1606_s13 = smov %s1009_s14  ;;  %s1607_s14 = smov %s1143_s7 }
  0xf5   : > { %s1608_s15 = smov %s1021_s17  ;;  %s1609_s16 = smov %s1025_s18 }
  0xf6   : > { %s1610_s17 = smov %s1600_s8  ;;  %20 = sbr.rel (!%p18_p8) target bundleno = 13 (0xd), region = 102 }
  0xf7   : > { %s1611_s18 = smov %s1601_s21 }
  0xfd   :  { %548 = vsyncpa [#allocation3], 1 }
  0xfe   :  { %550 = vsyncpa [#allocation3 + $0x1], 1 }
  0xff   :  { %551 = vsyncpa [#allocation6], 1 }
 0x100   :  { %553 = vsyncpa [#allocation6 + $0x1], 1 }
 0x101   :  { %554 = vsyncpa [#allocation4], 1 }
 0x102   :  { %556 = vsyncpa [#allocation4 + $0x1], 1 }

</bundles_post_ra>
